<compile_context>
chip_gen: v5e
topology: v5e:2x2
jax: 0.10.0
libtpu: 0.0.40
codegen_flags: <defaults>
</compile_context>

<pallas_src>
import functools

import jax
import jax.numpy as jnp
from jax.experimental import pallas as pl
from jax.experimental.pallas import tpu as pltpu


def _round_up(v, m):
    return ((v + m - 1) // m) * m


# Resident-weight budget per fused call, chosen to fit v7x's 64 MiB VMEM with
# room for I/O double buffers + compiler scratch (also fine on v5e/v6e).
_WEIGHT_BUDGET_BYTES = 40 << 20
_VMEM_LIMIT_FLOOR = 32 << 20
_VMEM_LIMIT_CAP = 60 << 20


# ----------------------------------------------------------------------------
# Fused MLP kernel for one group of layers and one (tm, *) batch tile.
# refs layout: (x_ref, w0, b0, ..., w_{L-1}, b_{L-1}, o_ref, scratch0, scratch1)
# ----------------------------------------------------------------------------
def _mlp_group_kernel(*refs, num_layers, relu_on_last):
    x_ref = refs[0]
    o_ref = refs[1 + 2 * num_layers]
    scratch = (refs[2 + 2 * num_layers], refs[3 + 2 * num_layers])

    # Fold the f32 -> bf16 cast into the kernel (no wrapper-side cast pass).
    h = x_ref[...].astype(jnp.bfloat16)
    for i in range(num_layers):
        w_ref = refs[1 + 2 * i]                     # bf16 (Kp_i, Np_i)
        b_ref = refs[2 + 2 * i]                     # f32  (1,   Np_i)
        np_i = w_ref.shape[1]
        acc = jnp.dot(h, w_ref[...], preferred_element_type=jnp.float32) + b_ref[...]
        if i < num_layers - 1:
            # ReLU in f32 (VPU), then stage the bf16 activation through a
            # reused ping-pong VMEM scratch to cap the live activation set.
            buf = scratch[i % 2]
            buf[:, :np_i] = jnp.maximum(acc, 0.0).astype(jnp.bfloat16)
            h = buf[:, :np_i]
        else:
            if relu_on_last:                        # group ends mid-network
                acc = jnp.maximum(acc, 0.0)
            o_ref[...] = acc.astype(o_ref.dtype)    # final Linear: no ReLU


# ----------------------------------------------------------------------------
# One fused pallas_call over a group of consecutive layers.
# ----------------------------------------------------------------------------
def _run_group(x, layers, tm, relu_on_last, out_dtype):
    Mp, K0 = x.shape
    num_layers = len(layers)
    Np_out = layers[-1][0].shape[1]
    maxNp = max(wp.shape[1] for wp, _ in layers)

    in_specs = [pl.BlockSpec((tm, K0), lambda i: (i, 0))]
    args = [x]
    flops = 0
    w_bytes = 0
    for wp, bp in layers:
        kp, np_ = wp.shape
        # Grid-invariant blocks: single-buffered (no pointless double buffer).
        in_specs.append(pl.BlockSpec((kp, np_), lambda i: (0, 0),
                                     pipeline_mode=pl.Buffered(1)))
        in_specs.append(pl.BlockSpec((1, np_), lambda i: (0, 0),
                                     pipeline_mode=pl.Buffered(1)))
        args.append(wp)
        args.append(bp)
        flops += 2 * Mp * kp * np_
        w_bytes += wp.size * wp.dtype.itemsize + bp.size * bp.dtype.itemsize

    out_itemsize = jnp.dtype(out_dtype).itemsize
    in_bytes = x.size * x.dtype.itemsize
    out_bytes = Mp * Np_out * out_itemsize

    # Explicit VMEM budget: resident weights (single-buffered) + double-buffered
    # x/out tiles + ping-pong bf16 activation scratch + f32 accumulator.
    need = (w_bytes
            + 2 * tm * K0 * x.dtype.itemsize
            + 2 * tm * Np_out * out_itemsize
            + 2 * tm * maxNp * 2
            + tm * maxNp * 4)
    vmem_limit = int(min(max(need * 1.3, _VMEM_LIMIT_FLOOR), _VMEM_LIMIT_CAP))

    kernel = functools.partial(_mlp_group_kernel, num_layers=num_layers,
                               relu_on_last=relu_on_last)
    return pl.pallas_call(
        kernel,
        out_shape=jax.ShapeDtypeStruct((Mp, Np_out), out_dtype),
        grid_spec=pltpu.PrefetchScalarGridSpec(
            num_scalar_prefetch=0,
            grid=(Mp // tm,),
            in_specs=in_specs,
            out_specs=pl.BlockSpec((tm, Np_out), lambda i: (i, 0)),
            scratch_shapes=[pltpu.VMEM((tm, maxNp), jnp.bfloat16),
                            pltpu.VMEM((tm, maxNp), jnp.bfloat16)],
        ),
        compiler_params=pltpu.CompilerParams(
            dimension_semantics=("parallel",),
            vmem_limit_bytes=vmem_limit),
        cost_estimate=pl.CostEstimate(
            flops=flops, transcendentals=0,
            bytes_accessed=in_bytes + w_bytes + out_bytes),
    )(*args)


# ----------------------------------------------------------------------------
# Forward wrapper
# ----------------------------------------------------------------------------
def neural_net_forward(x, padded_params, output_size, out_dtype=None):
    """x: (M, input_size) -> (M, output_size)."""
    out_dtype = x.dtype if out_dtype is None else out_dtype
    M = x.shape[0]
    maxNp_all = max(wp.shape[1] for wp, _ in padded_params)

    # Batch (M) tiling: multiple of 16 (bf16 sublane packing) and always >= 2
    # grid steps so dimension_semantics=("parallel",) shards v7x's 2 TCs.
    if M <= 512:
        tm = max(16, _round_up(M, 32) // 2)
        Mp = max(2 * tm, _round_up(M, tm))
    else:
        tm = 128
        for cand in (512, 256):
            if cand * maxNp_all * 10 <= (12 << 20):   # f32 acc + bf16 scratch set
                tm = cand
                break
        Mp = _round_up(M, tm)

    # Pad rows only when needed; K is never padded (layer-0 weight keeps fan_in).
    xp = x if Mp == M else jnp.pad(x, ((0, Mp - M), (0, 0)))

    # Split into groups whose resident weight stack fits the v7x-safe budget
    # (normally a single group -> a single fused pallas_call).
    # TODO(synk): a single layer larger than the budget would additionally need
    # an N-tiling grid axis; here it simply becomes its own group.
    groups, cur, cur_bytes = [], [], 0
    for wp, bp in padded_params:
        nb = wp.size * wp.dtype.itemsize + bp.size * bp.dtype.itemsize
        if cur and cur_bytes + nb > _WEIGHT_BUDGET_BYTES:
            groups.append(cur)
            cur, cur_bytes = [], 0
        cur.append((wp, bp))
        cur_bytes += nb
    groups.append(cur)

    h = xp
    for gi, group in enumerate(groups):
        final = gi == len(groups) - 1
        h = _run_group(h, group, tm,
                       relu_on_last=not final,
                       out_dtype=(out_dtype if final else jnp.bfloat16))
    return h[:M, :output_size]


# ----------------------------------------------------------------------------
# Parameter setup (PyTorch nn.Linear-style init) + one-time padding
# ----------------------------------------------------------------------------
def init_params(key, input_size, units, output_size):
    dims = [input_size] + list(units) + [output_size]
    params = []
    for i in range(len(dims) - 1):
        fan_in, fan_out = dims[i], dims[i + 1]
        key, kw, kb = jax.random.split(key, 3)
        bound = 1.0 / (fan_in ** 0.5)
        w = jax.random.uniform(kw, (fan_out, fan_in), jnp.float32, -bound, bound)
        b = jax.random.uniform(kb, (fan_out,), jnp.float32, -bound, bound)
        params.append((w, b))
    return params


def prepare_padded_params(params):
    """Pre-transpose to (in, out), cast weights to bf16, zero-pad once.

    Layer 0 keeps its true fan_in (x is fed unpadded in K); later layers pad K
    to the previous layer's padded N so activations chain without re-padding.
    Output dims pad to multiples of 128 (lane-dense stores); zero padding keeps
    padded lanes exactly 0 through bias + ReLU.
    """
    padded = []
    prev_np = None
    for i, (w, b) in enumerate(params):
        fan_out, fan_in = w.shape
        Np = _round_up(fan_out, 128)
        Kp = fan_in if i == 0 else prev_np
        wp = jnp.pad(w.T.astype(jnp.bfloat16),
                     ((0, Kp - fan_in), (0, Np - fan_out)))
        bp = jnp.pad(b.astype(jnp.float32), (0, Np - fan_out)).reshape(1, Np)
        padded.append((wp, bp))
        prev_np = Np
    return padded


def reference_forward(x, params):
    out = x
    for i, (w, b) in enumerate(params):
        out = out @ w.T + b
        if i < len(params) - 1:
            out = jnp.maximum(out, 0.0)
    return out


if __name__ == "__main__":
    batch, input_size = 2, 16
    units = [32, 32]
    output_size = 4

    key = jax.random.PRNGKey(0)
    k_x, k_p = jax.random.split(key)
    x = jax.random.normal(k_x, (batch, input_size), jnp.float32)
    params = init_params(k_p, input_size, units, output_size)
    padded_params = prepare_padded_params(params)

    out = neural_net_forward(x, padded_params, output_size)
    jax.block_until_ready(out)
    assert out.shape == (batch, output_size), out.shape

    # Relaxed tolerance: kernel uses bf16 MXU operands with f32 accumulation.
    ref = reference_forward(x, params)
    max_err = float(jnp.max(jnp.abs(out - ref)))
    assert max_err < 0.1, f"max abs error vs f32 reference: {max_err}"

    print("KERNEL_OK")
</pallas_src>

<mosaic_0001>
module attributes {stable_mosaic.version = 11 : i64} {
  func.func @_mlp_group_kernel(%arg0: i32, %arg1: memref<16x16xf32, #tpu.memory_space<vmem>>, %arg2: memref<16x128xbf16, #tpu.memory_space<vmem>>, %arg3: memref<1x128xf32, #tpu.memory_space<vmem>>, %arg4: memref<128x128xbf16, #tpu.memory_space<vmem>>, %arg5: memref<1x128xf32, #tpu.memory_space<vmem>>, %arg6: memref<128x128xbf16, #tpu.memory_space<vmem>>, %arg7: memref<1x128xf32, #tpu.memory_space<vmem>>, %arg8: memref<16x128xf32, #tpu.memory_space<vmem>>, %arg9: memref<16x128xbf16, #tpu.memory_space<vmem>>, %arg10: memref<16x128xbf16, #tpu.memory_space<vmem>>) attributes {dimension_semantics = [#tpu.dimension_semantics<parallel>], iteration_bounds = array<i64: 2>, scalar_prefetch = 0 : i64, scratch_operands = 2 : i64, tpu.core_type = #tpu.core_type<tc>, window_params = [{transform_indices = @transform_0, window_bounds = array<i64: 16, 16>}, {pipeline_mode = #tpu.pipeline_mode<synchronous>, transform_indices = @transform_1, window_bounds = array<i64: 16, 128>}, {pipeline_mode = #tpu.pipeline_mode<synchronous>, transform_indices = @transform_2, window_bounds = array<i64: 1, 128>}, {pipeline_mode = #tpu.pipeline_mode<synchronous>, transform_indices = @transform_3, window_bounds = array<i64: 128, 128>}, {pipeline_mode = #tpu.pipeline_mode<synchronous>, transform_indices = @transform_4, window_bounds = array<i64: 1, 128>}, {pipeline_mode = #tpu.pipeline_mode<synchronous>, transform_indices = @transform_5, window_bounds = array<i64: 128, 128>}, {pipeline_mode = #tpu.pipeline_mode<synchronous>, transform_indices = @transform_6, window_bounds = array<i64: 1, 128>}, {transform_indices = @transform_7, window_bounds = array<i64: 16, 128>}]} {
    %c0 = arith.constant 0 : index
    %c0_0 = arith.constant 0 : index
    %0 = vector.load %arg1[%c0, %c0_0] : memref<16x16xf32, #tpu.memory_space<vmem>>, vector<16x16xf32>
    %1 = arith.truncf %0 : vector<16x16xf32> to vector<16x16xbf16>
    %c0_1 = arith.constant 0 : index
    %c0_2 = arith.constant 0 : index
    %2 = vector.load %arg2[%c0_1, %c0_2] : memref<16x128xbf16, #tpu.memory_space<vmem>>, vector<16x128xbf16>
    %cst = arith.constant dense<0.000000e+00> : vector<16x128xf32>
    %3 = tpu.matmul %1, %2, %cst {dimension_numbers = #tpu.dot_dimension_numbers<[1], [0], [0], [1], [0, 0, 1, 1], [], []>} : vector<16x16xbf16>, vector<16x128xbf16>, vector<16x128xf32> -> vector<16x128xf32>
    %c0_3 = arith.constant 0 : index
    %c0_4 = arith.constant 0 : index
    %4 = vector.load %arg3[%c0_3, %c0_4] : memref<1x128xf32, #tpu.memory_space<vmem>>, vector<1x128xf32>
    %5 = vector.broadcast %4 : vector<1x128xf32> to vector<16x128xf32>
    %6 = arith.addf %3, %5 : vector<16x128xf32>
    %cst_5 = arith.constant 0.000000e+00 : f32
    %7 = vector.broadcast %cst_5 : f32 to vector<16x128xf32>
    %8 = arith.maximumf %6, %7 : vector<16x128xf32>
    %9 = arith.truncf %8 : vector<16x128xf32> to vector<16x128xbf16>
    %c0_6 = arith.constant 0 : index
    %c0_7 = arith.constant 0 : index
    %10 = vector.load %arg9[%c0_6, %c0_7] : memref<16x128xbf16, #tpu.memory_space<vmem>>, vector<16x128xbf16>
    tpu.vector_store %arg9[%c0_6, %c0_7], %9 {strides = array<i32>} : memref<16x128xbf16, #tpu.memory_space<vmem>>, vector<16x128xbf16>,
    %c0_8 = arith.constant 0 : index
    %c0_9 = arith.constant 0 : index
    %11 = vector.load %arg9[%c0_8, %c0_9] : memref<16x128xbf16, #tpu.memory_space<vmem>>, vector<16x128xbf16>
    %c0_10 = arith.constant 0 : index
    %c0_11 = arith.constant 0 : index
    %12 = vector.load %arg4[%c0_10, %c0_11] : memref<128x128xbf16, #tpu.memory_space<vmem>>, vector<128x128xbf16>
    %cst_12 = arith.constant dense<0.000000e+00> : vector<16x128xf32>
    %13 = tpu.matmul %11, %12, %cst_12 {dimension_numbers = #tpu.dot_dimension_numbers<[1], [0], [0], [1], [0, 0, 1, 1], [], []>} : vector<16x128xbf16>, vector<128x128xbf16>, vector<16x128xf32> -> vector<16x128xf32>
    %c0_13 = arith.constant 0 : index
    %c0_14 = arith.constant 0 : index
    %14 = vector.load %arg5[%c0_13, %c0_14] : memref<1x128xf32, #tpu.memory_space<vmem>>, vector<1x128xf32>
    %15 = vector.broadcast %14 : vector<1x128xf32> to vector<16x128xf32>
    %16 = arith.addf %13, %15 : vector<16x128xf32>
    %cst_15 = arith.constant 0.000000e+00 : f32
    %17 = vector.broadcast %cst_15 : f32 to vector<16x128xf32>
    %18 = arith.maximumf %16, %17 : vector<16x128xf32>
    %19 = arith.truncf %18 : vector<16x128xf32> to vector<16x128xbf16>
    %c0_16 = arith.constant 0 : index
    %c0_17 = arith.constant 0 : index
    %20 = vector.load %arg10[%c0_16, %c0_17] : memref<16x128xbf16, #tpu.memory_space<vmem>>, vector<16x128xbf16>
    tpu.vector_store %arg10[%c0_16, %c0_17], %19 {strides = array<i32>} : memref<16x128xbf16, #tpu.memory_space<vmem>>, vector<16x128xbf16>,
    %c0_18 = arith.constant 0 : index
    %c0_19 = arith.constant 0 : index
    %21 = vector.load %arg10[%c0_18, %c0_19] : memref<16x128xbf16, #tpu.memory_space<vmem>>, vector<16x128xbf16>
    %c0_20 = arith.constant 0 : index
    %c0_21 = arith.constant 0 : index
    %22 = vector.load %arg6[%c0_20, %c0_21] : memref<128x128xbf16, #tpu.memory_space<vmem>>, vector<128x128xbf16>
    %cst_22 = arith.constant dense<0.000000e+00> : vector<16x128xf32>
    %23 = tpu.matmul %21, %22, %cst_22 {dimension_numbers = #tpu.dot_dimension_numbers<[1], [0], [0], [1], [0, 0, 1, 1], [], []>} : vector<16x128xbf16>, vector<128x128xbf16>, vector<16x128xf32> -> vector<16x128xf32>
    %c0_23 = arith.constant 0 : index
    %c0_24 = arith.constant 0 : index
    %24 = vector.load %arg7[%c0_23, %c0_24] : memref<1x128xf32, #tpu.memory_space<vmem>>, vector<1x128xf32>
    %25 = vector.broadcast %24 : vector<1x128xf32> to vector<16x128xf32>
    %26 = arith.addf %23, %25 : vector<16x128xf32>
    %c0_25 = arith.constant 0 : index
    %c0_26 = arith.constant 0 : index
    %27 = vector.load %arg8[%c0_25, %c0_26] : memref<16x128xf32, #tpu.memory_space<vmem>>, vector<16x128xf32>
    tpu.vector_store %arg8[%c0_25, %c0_26], %26 {strides = array<i32>} : memref<16x128xf32, #tpu.memory_space<vmem>>, vector<16x128xf32>,
    return
  }
  func.func @transform_0(%arg0: i32) -> (i32, i32) {
    %c0_i32 = arith.constant 0 : i32
    %c0_i32_0 = arith.constant 0 : i32
    return %arg0, %c0_i32 : i32, i32
  }
  func.func @transform_1(%arg0: i32) -> (i32, i32) {
    %c0_i32 = arith.constant 0 : i32
    %c0_i32_0 = arith.constant 0 : i32
    %c0_i32_1 = arith.constant 0 : i32
    return %c0_i32, %c0_i32_0 : i32, i32
  }
  func.func @transform_2(%arg0: i32) -> (i32, i32) {
    %c0_i32 = arith.constant 0 : i32
    %c0_i32_0 = arith.constant 0 : i32
    %c0_i32_1 = arith.constant 0 : i32
    return %c0_i32, %c0_i32_0 : i32, i32
  }
  func.func @transform_3(%arg0: i32) -> (i32, i32) {
    %c0_i32 = arith.constant 0 : i32
    %c0_i32_0 = arith.constant 0 : i32
    %c0_i32_1 = arith.constant 0 : i32
    return %c0_i32, %c0_i32_0 : i32, i32
  }
  func.func @transform_4(%arg0: i32) -> (i32, i32) {
    %c0_i32 = arith.constant 0 : i32
    %c0_i32_0 = arith.constant 0 : i32
    %c0_i32_1 = arith.constant 0 : i32
    return %c0_i32, %c0_i32_0 : i32, i32
  }
  func.func @transform_5(%arg0: i32) -> (i32, i32) {
    %c0_i32 = arith.constant 0 : i32
    %c0_i32_0 = arith.constant 0 : i32
    %c0_i32_1 = arith.constant 0 : i32
    return %c0_i32, %c0_i32_0 : i32, i32
  }
  func.func @transform_6(%arg0: i32) -> (i32, i32) {
    %c0_i32 = arith.constant 0 : i32
    %c0_i32_0 = arith.constant 0 : i32
    %c0_i32_1 = arith.constant 0 : i32
    return %c0_i32, %c0_i32_0 : i32, i32
  }
  func.func @transform_7(%arg0: i32) -> (i32, i32) {
    %c0_i32 = arith.constant 0 : i32
    %c0_i32_0 = arith.constant 0 : i32
    return %arg0, %c0_i32 : i32, i32
  }
}

</mosaic_0001>

<bundles_post_ra>
// kernel: tpu_custom_call.1
= control target key start
LH: loop header
LB: loop body
LE: loop exit
PB: predicated region body
PF: predicated region fallthrough
CT: control target
= control target key end

     0   :  { %12 = vsyncpa [#allocation5], 0  ;;  %s1131_s0 = inlined_call_operand.vmem [shape: f32[32,16], index: 0, kind: input, shape index: {}]   ;;  %s1132_s1 = inlined_call_operand.vmem [shape: bf16[16,128], index: 1, kind: input, shape index: {}]   ;;  %s1133_s2 = inlined_call_operand.vmem [shape: f32[1,128], index: 2, kind: input, shape index: {}]   ;;  %s1134_s3 = inlined_call_operand.hbm [shape: bf16[128,128], index: 3, kind: input, shape index: {}]   ;;  %s1135_s4 = inlined_call_operand.vmem [shape: f32[1,128], index: 4, kind: input, shape index: {}]   ;;  %s1136_s5 = inlined_call_operand.hbm [shape: bf16[128,128], index: 5, kind: input, shape index: {}]   ;;  %s1137_s6 = inlined_call_operand.vmem [shape: f32[1,128], index: 6, kind: input, shape index: {}]   ;;  %s1138_s7 = inlined_call_operand.hbm [shape: f32[32,128], index: 7, kind: output, shape index: {}]  }
   0x1   :  { %13 = vsyncpa [#allocation8], 0 }
   0x2   :  { %14 = vsyncpa [#allocation6], 0 }
   0x3   :  { %16 = vsyncpa [#allocation6 + $0x1], 0  ;;  %s1010_s24 = smov 0   ;;  %s1012_s25 = smov 0  }
   0x4   :  { %s1014_s26 = smov 0   ;;  %s1016_s27 = smov 0  }
   0x5 LB: > { %s1031_s28 = sadd.s32 4294967295, %s962_s27   ;;  %s642_s29 = sadd.s32 4294967294, %s962_s27   ;;  %s962_s27 = sphi %s1016_s27, %s1145_s27   ;;  %s958_s26 = sphi %s1014_s26, %s1144_s26   ;;  %s954_s25 = sphi %s1012_s25, %s1143_s25   ;;  %s950_s24 = sphi %s1010_s24, %s1142_s24  }
   0x6   : > { %s1035_s30 = sadd.s32 1, %s962_s27   ;;  %s181_s8 = sadd.s32 1, %s958_s26 }
   0x7   : > { %s178_s9 = ssub.s32 %s962_s27, %s1035_s30  ;;  %p191_p0 = scmp.ne.s32.totalorder %s958_s26, %s954_s25 }
   0x8   : > { %p179_p1 = scmp.eq.s32.totalorder %s178_s9, 0  ;;  %p192_p2 = scmp.eq.s32.totalorder %s1031_s28, 1 }
   0x9   : > { %p197_p3 = scmp.ne.s32.totalorder %s954_s25, %s950_s24  ;;  %p198_p4 = scmp.eq.s32.totalorder %s642_s29, 1 }
   0xa   : > { %s1046_s10 = scalar_select %p179_p1, %s958_s26, %s181_s8  }
   0xb   : > { %p1048_p5 = por %p192_p2, %p191_p0  ;;  %p1052_p6 = por %p198_p4, %p197_p3 }
   0xc   : > { %p643_p7 = scmp.ge.s32.totalorder %s962_s27, 1  ;;  %p205_p8 = scmp.lt.s32.totalorder %s962_s27, 3 }
   0xd   : > { %p786_p9 = scmp.eq.s32.totalorder %s1031_s28, 0  ;;  %s222_s16 = sshll.u32 %s1134_s3, 4  ;;  %s223_s16 = int_to_ptr.hbm [resolvable:$true] %s222_s16 }
   0xe   : > { %p1059_p10 = pnand %p643_p7, %p205_p8  ;;  %s964_s17 = smov [#allocation4]  }
   0xf   : > { %s224_s18 = sshll.u32 %s964_s17, 4  ;;  %s239_s21 = sshll.u32 %s1136_s5, 4  ;;  %s225_s18 = int_to_ptr.vmem [resolvable:$true] %s224_s18  ;;  %s240_s21 = int_to_ptr.hbm [resolvable:$true] %s239_s21 }
  0x10   : > { %p775_p11 = pneg %p1059_p10  ;;  %s965_s22 = smov 64  }
  0x11   : > { %s966_s23 = smov 4   ;;  %s967_s29 = smov [#allocation7]  }
  0x12   : > { %p776_p12 = pnand %p786_p9, %p775_p11  ;;  %s241_s8 = sshll.u32 %s967_s29, 4  ;;  %s242_s8 = int_to_ptr.vmem [resolvable:$true] %s241_s8 }
  0x13   : > { %269 = sbr.rel (%p1059_p10) target bundleno = 478 (0x1de), region = 48 }
  0x14   : > { %778 = dma.hbm_to_vmem [thread:$0]  (!%p776_p12), %s223_s16, 1024, %s225_s18, [#allocation5], %s965_s22, %s965_s22, %s966_s23  }
  0x15   : > { %781 = dma.hbm_to_vmem [thread:$0]  (!%p776_p12), %s240_s21, 1024, %s242_s8, [#allocation8], %s965_s22, %s965_s22, %s966_s23  }
  0x18   : > { %937 = dma.done.wait (%p786_p9), [#allocation5], 1024  }
  0x19   : > { %939 = vsyncadd (%p786_p9), [#allocation5], 4294966272 }
  0x1a   : > { %941 = dma.done.wait (%p786_p9), [#allocation8], 1024  }
  0x1b   : > { %943 = vsyncadd (%p786_p9), [#allocation8], 4294966272  ;;  %s651_s9 = sshll.u32 %s1031_s28, 1  ;;  %v735_v0 = vld [vmem:[%s1132_s1] sm:$0xff]  ;;  %v744_v4 = vld [vmem:[#allocation4 + $0x38] sm:$0xff]  ;;  %vm330_vm0 = vcmask 130048  }
  0x1c   : > { %p308_p13 = scmp.lt.s32.totalorder %s651_s9, 3  ;;  %341 = vmatpush.bf16.msra.mxu0 %v735_v0  ;;  %430 = vmatpush.bf16.msra.mxu1 %v744_v4  ;;  %v743_v5 = vld [vmem:[#allocation4 + $0x30] sm:$0xff]  ;;  %v742_v6 = vld [vmem:[#allocation4 + $0x28] sm:$0xff]  ;;  %v741_v7 = vld [vmem:[#allocation4 + $0x20] sm:$0xff]  ;;  %s304_s23 = sand.u32 1, %s954_s25  }
  0x1d   : > { %v740_v8 = vld [vmem:[#allocation4 + $0x18] sm:$0xff]  ;;  %v739_v9 = vld [vmem:[#allocation4 + $0x10] sm:$0xff]  ;;  %v738_v10 = vld [vmem:[#allocation4 + $0x8] sm:$0xff]  ;;  %s650_s29 = sshll.u32 %s304_s23, 4  ;;  %s543_s20 = scalar_lea.sflag [#allocation6], %s304_s23 }
  0x1e   : > { %s1147_s9 = smov (!%p308_p13, %s651_s9), 3  ;;  %v737_v11 = vld [vmem:[#allocation4] sm:$0xff]  ;;  %v753_v12 = vld [vmem:[#allocation7 + $0x38] sm:$0xff]  ;;  %v752_v13 = vld [vmem:[#allocation7 + $0x30] sm:$0xff]  ;;  %s306_s17 = scalar_lea.vmem [#allocation9], %s650_s29 }
  0x1f   : > { %s652_s14 = sshll.u32 %s1147_s9, 3  ;;  %526 = vmatpush.bf16.msra.mxu2 %v753_v12  ;;  %v829_v15 = vld [vmem:[%s1133_s2] ss:$0 sm:$0xff]  ;;  %v751_v23 = vld [vmem:[#allocation7 + $0x28] sm:$0xff]  ;;  %v750_v24 = vld [vmem:[#allocation7 + $0x20] sm:$0xff]  ;;  %s555_s18 = sshll.u32 %s306_s17, 4  ;;  %s556_s18 = int_to_ptr.vmem [resolvable:$true] %s555_s18 }
  0x20   : > { %s311_s16 = scalar_lea.vmem %s1131_s0, %s652_s14  ;;  %431 = vmatpush.bf16.msra.mxu1 %v743_v5  ;;  %v749_v25 = vld [vmem:[#allocation7 + $0x18] sm:$0xff]  ;;  %v748_v26 = vld [vmem:[#allocation7 + $0x10] sm:$0xff]  ;;  %v747_v27 = vld [vmem:[#allocation7 + $0x8] sm:$0xff]  ;;  %s754_s14 = sshll.u32 %s1031_s28, 4 }
  0x21   : > { %v315_v1 = vld [vmem:[%s311_s16] sm:$0xff]  ;;  %v316_v2 = vld [vmem:[%s311_s16 + $0x8] sm:$0xff]  ;;  %v746_v28 = vld [vmem:[#allocation7] sm:$0xff]  ;;  %s554_s16 = scalar_lea.hbm %s1138_s7, %s754_s14  ;;  %s912_s29 = scalar_lea.hbm %s1138_s7, 32 }
  0x22   : > { %v317_v3 = vpack.c.bf16 %v316_v2, %v315_v1  ;;  %v830_v30 = vld [vmem:[%s1135_s4] ss:$0 sm:$0xff]  ;;  %s557_s19 = sshll.u32 %s554_s16, 4  ;;  %s558_s19 = int_to_ptr.hbm [resolvable:$true] %s557_s19 }
  0x23   : > { %527 = vmatpush.bf16.msra.mxu2 %v752_v13  ;;  %v831_v38 = vld [vmem:[%s1137_s6] ss:$0 sm:$0xff]  ;;  %s906_s21 = sshra.s32 %s558_s19, 4  ;;  %s907_s21 = int_to_ptr.hbm [resolvable:$true] %s906_s21 }
  0x24   : > { %657 = vmatmul.msk.bf16.vlgmr.msra.gmra.mxu0 %vm330_vm0, %v317_v3  ;;  %432 = vmatpush.bf16.msra.mxu1 %v742_v6  ;;  %s908_s28 = scalar_lea.hbm %s907_s21, 16  ;;  %p913_p3 = scmp.lt.s32.totalorder %s907_s21, %s1138_s7 }
  0x25   : > { %p909_p0 = scmp.ne.s32.totalorder %s907_s21, %s908_s28  ;;  %p914_p4 = scmp.lt.s32.totalorder %s912_s29, %s908_s28 }
  0x27   : > { %528 = vmatpush.bf16.msra.mxu2 %v751_v23  ;;  %p910_p1 = pnand %p909_p0, %p1048_p5  ;;  %p915_p7 = por %p914_p4, %p913_p3 }
  0x28   : > { %433 = vmatpush.bf16.msra.mxu1 %v741_v7 }
  0x29   : > { %p911_p2 = pneg %p910_p1 }
  0x2b   : > { %529 = vmatpush.bf16.msra.mxu2 %v750_v24  ;;  %p916_p8 = pnand %p915_p7, %p911_p2 }
  0x2c   : > { %434 = vmatpush.bf16.msra.mxu1 %v740_v8 }
  0x2f   : > { %530 = vmatpush.bf16.msra.mxu2 %v749_v25 }
  0x30   : > { %435 = vmatpush.bf16.msra.mxu1 %v739_v9 }
  0x33   : > { %531 = vmatpush.bf16.msra.mxu2 %v748_v26 }
  0x34   : > { %436 = vmatpush.bf16.msra.mxu1 %v738_v10 }
  0x37   : > { %532 = vmatpush.bf16.msra.mxu2 %v747_v27 }
  0x38   : > { %437 = vmatpush.bf16.msra.mxu1 %v737_v11 }
  0x3b   : > { %533 = vmatpush.bf16.msra.mxu2 %v746_v28 }
  0xa1   : > { %v343_v14 = vpop.f32.mrf.mxu0 }
  0xa2   : > { %v344_v16 = vadd.f32 %v829_v15, %v343_v14 }
  0xa4   : > { %v348_v19 = vmax.f32 %v344_v16, 0.0 }
  0xa9   : > { %v345_v17 = vpop.f32.mrf.mxu0 }
  0xaa   : > { %v346_v18 = vadd.f32 %v829_v15, %v345_v17 }
  0xac   : > { %v349_v20 = vmax.f32 %v346_v18, 0.0 }
  0xae   : > { %v758_v21 = vpack.c.bf16 %v349_v20, %v348_v19 }
  0xb0   : > { %759 = vst [vmem:[#allocation2] sm:$0xff] %v758_v21  }
  0xb7   : > { %v736_v22 = vld [vmem:[#allocation2] sm:$0xff] }
  0xb8   : > { %438 = vmatmul.bf16.vlgmr.msra.gmra.mxu1 %v736_v22 }
 0x135   : > { %v439_v29 = vpop.f32.mrf.mxu1 }
 0x136   : > { %v440_v31 = vadd.f32 %v830_v30, %v439_v29 }
 0x138   : > { %v444_v34 = vmax.f32 %v440_v31, 0.0 }
 0x13d   : > { %v441_v32 = vpop.f32.mrf.mxu1 }
 0x13e   : > { %v442_v33 = vadd.f32 %v830_v30, %v441_v32 }
 0x140   : > { %v445_v35 = vmax.f32 %v442_v33, 0.0 }
 0x142   : > { %v763_v36 = vpack.c.bf16 %v445_v35, %v444_v34 }
 0x144   : > { %764 = vst [vmem:[#allocation3] sm:$0xff] %v763_v36  }
 0x14b   : > { %v745_v37 = vld [vmem:[#allocation3] sm:$0xff] }
 0x14c   : > { %534 = vmatmul.bf16.vlgmr.msra.gmra.mxu2 %v745_v37 }
 0x1cf   : > { %v535_v39 = vpop.f32.mrf.mxu2 }
 0x1d0   : > { %v536_v40 = vadd.f32 %v831_v38, %v535_v39 }
 0x1d2   : > { %540 = vst [vmem:[%s306_s17] sm:$0xff] %v536_v40 }
 0x1d7   : > { %v537_v41 = vpop.f32.mrf.mxu2 }
 0x1d8   : > { %v538_v42 = vadd.f32 %v831_v38, %v537_v41 }
 0x1da   : > { %541 = vst [vmem:[%s306_s17 + $0x8] sm:$0xff] %v538_v42 }
 0x1db   : > { %919 = shalt.err (!%p916_p8)
}
 0x1dc   : > { %s968_s23 = smov 128   ;;  %s969_s15 = smov 8  }
 0x1dd   : > { %773 = dma.vmem_to_hbm [thread:$0]  (%p1048_p5), %s556_s18, 256, %s558_s19, %s543_s20, %s968_s23, %s968_s23, %s969_s15  }
 0x1de PF: > { %p790_p9 = scmp.ge.s32.totalorder %s962_s27, 2  ;;  %s572_s13 = sand.u32 1, %s950_s24  }
 0x1df   : > { %s573_s16 = scalar_lea.sflag [#allocation6], %s572_s13 }
 0x1e0   : > { %p783_p10 = pnand %p790_p9, %p1052_p6 }
 0x1e2   : > { %p784_p11 = pneg %p783_p10 }
 0x1e4   : > { %945 = dma.done.wait (%p784_p11), %s573_s16, 256  }
 0x1e5   : > { %947 = vsyncadd (%p784_p11), %s573_s16, 4294967040  ;;  %p19_p12 = scmp.ge.s32.totalorder %s1035_s30, 4   ;;  %s1142_s24 = smov %s954_s25 }
 0x1e6   : > { %s1143_s25 = smov %s958_s26  ;;  %s1144_s26 = smov %s1046_s10 }
 0x1e7   : > { %s1145_s27 = smov %s1035_s30  ;;  %21 = sbr.rel (!%p19_p12) target bundleno = 5 (0x5), region = 92 }
 0x1ec   :  { %579 = vsyncpa [#allocation5], 1 }
 0x1ed   :  { %581 = vsyncpa [#allocation5 + $0x1], 1 }
 0x1ee   :  { %582 = vsyncpa [#allocation8], 1 }
 0x1ef   :  { %583 = vsyncpa [#allocation6], 1 }
 0x1f0   :  { %585 = vsyncpa [#allocation6 + $0x1], 1 }

</bundles_post_ra>
